<compile_context>
chip_gen: v7x
topology: tpu7x:2x2x1
jax: 0.10.0
libtpu: 0.0.40
codegen_flags: <defaults>
</compile_context>

<pallas_src>
import functools

import jax
import jax.numpy as jnp
from jax.experimental import pallas as pl
from jax.experimental.pallas import tpu as pltpu


def _round_up(x, m):
    return ((x + m - 1) // m) * m


def _sample_impostors(key, n):
    """Vectorized, on-device equivalent of the numpy rejection loop: imp[i] != i, uniform."""
    k1, k2 = jax.random.split(key)
    ar = jnp.arange(n, dtype=jnp.int32)
    ioff = jax.random.randint(k1, (n,), 1, n, dtype=jnp.int32)
    aoff = jax.random.randint(k2, (n,), 1, n, dtype=jnp.int32)
    return (ar + ioff) % n, (ar + aoff) % n


def _dot_loss_kernel(img_ref, aud_ref, iidx_ref, aidx_ref, out_ref, *, tm, n, n_pad, margin):
    t = pl.program_id(0)
    start = pl.multiple_of(t * tm, tm)

    # Anchor rows for this tile, sliced out of the VMEM-resident full arrays
    # (upcast per-tile; the DMA stays in the native dtype).
    img_t = img_ref[pl.ds(start, tm), :].astype(jnp.float32)          # (tm, d)
    aud_t = aud_ref[pl.ds(start, tm), :].astype(jnp.float32)          # (tm, d)

    # In-kernel gather of impostor rows: exact one-hot (tm, n_pad) @ resident (n_pad, d)
    # on the MXU. Avoids any HBM-side gather / extra streamed inputs.
    iidx = iidx_ref[0]                                                # (tm, 1) int32
    aidx = aidx_ref[0]                                                # (tm, 1) int32
    cols = jax.lax.broadcasted_iota(jnp.int32, (tm, n_pad), 1)
    img_imp = jnp.dot((cols == iidx).astype(img_ref.dtype), img_ref[...],
                      preferred_element_type=jnp.float32)             # (tm, d)
    aud_imp = jnp.dot((cols == aidx).astype(aud_ref.dtype), aud_ref[...],
                      preferred_element_type=jnp.float32)             # (tm, d)

    # Per-row dot products (VPU mul + XLU lane reduction).
    anchorsim = jnp.sum(img_t * aud_t, axis=-1, keepdims=True)        # dot(image[i],        audio[i])
    iimpsim = jnp.sum(img_imp * aud_t, axis=-1, keepdims=True)        # dot(image[I_imp[i]], audio[i])
    aimpsim = jnp.sum(img_t * aud_imp, axis=-1, keepdims=True)        # dot(image[i],        audio[A_imp[i]])

    m = jnp.float32(margin)
    a2i = m + iimpsim - anchorsim
    i2a = m + aimpsim - anchorsim
    per_row = jnp.maximum(a2i, 0.0) + jnp.maximum(i2a, 0.0)           # hinge == relu

    # Mask rows that only exist because of batch padding.
    rows = start + jax.lax.broadcasted_iota(jnp.int32, (tm, 1), 0)
    per_row = jnp.where(rows < n, per_row, 0.0)

    # Per-tile partial sum; the tiny final reduction / division happens in JAX.
    out_ref[...] = jnp.sum(per_row, axis=0, keepdims=True)[None, :, :]


@functools.partial(jax.jit, static_argnames=("margin",))
def dot_loss(image_outputs, audio_outputs, key, margin=1.0):
    """Pallas implementation of DotLoss.forward. Returns a shape-(1,) float32 loss."""
    assert image_outputs.ndim == 2 and audio_outputs.ndim == 2
    n, d = image_outputs.shape
    assert audio_outputs.shape == (n, d)
    assert n >= 2, "need at least 2 rows to sample an impostor"

    i_imp, a_imp = _sample_impostors(key, n)

    # Tile the batch: >=2 tiles when n permits (dual-TC on v7x), tile rows a multiple of 8
    # sublanes, capped at 512 rows so the per-tile one-hot stays small.
    tm = max(8, min(512, _round_up(max(-(-n // 2), 1), 8)))
    n_pad = _round_up(n, tm)
    num_tiles = n_pad // tm

    if n_pad != n:
        pad = n_pad - n
        image_p = jnp.pad(image_outputs, ((0, pad), (0, 0)))
        audio_p = jnp.pad(audio_outputs, ((0, pad), (0, 0)))
        i_imp = jnp.pad(i_imp, (0, pad))
        a_imp = jnp.pad(a_imp, (0, pad))
    else:
        image_p, audio_p = image_outputs, audio_outputs

    iidx = i_imp.reshape(num_tiles, tm, 1).astype(jnp.int32)
    aidx = a_imp.reshape(num_tiles, tm, 1).astype(jnp.int32)

    # VMEM budget (v7x: 64 MiB physical, 32 MiB default scoped). Resident inputs are worst-case
    # double-buffered; add per-tile one-hots / f32 temporaries and a little slack.
    itemsize = jnp.dtype(image_p.dtype).itemsize
    resident = 2 * 2 * n_pad * d * itemsize
    per_tile = 2 * tm * n_pad * 4 + 6 * tm * d * 4 + 4 * tm * 4
    vmem_est = resident + 2 * per_tile + (1 << 20)
    # TODO(synk): for batches whose resident working set exceeds the v7x budget, switch to a
    # streamed formulation with per-row DMA gather of the impostor rows (memory_space=pl.ANY).
    assert vmem_est < 40 * 1024 * 1024, "batch too large for the VMEM-resident gather path"
    vmem_limit = int(min(vmem_est + (8 << 20), 48 * 1024 * 1024))

    kernel = functools.partial(_dot_loss_kernel, tm=tm, n=n, n_pad=n_pad, margin=float(margin))

    full_spec = pl.BlockSpec((n_pad, d), lambda t: (0, 0))            # DMA'd once, stays resident
    idx_spec = pl.BlockSpec((1, tm, 1), lambda t: (t, 0, 0))

    partials = pl.pallas_call(
        kernel,
        out_shape=jax.ShapeDtypeStruct((num_tiles, 1, 1), jnp.float32),
        grid_spec=pltpu.PrefetchScalarGridSpec(
            num_scalar_prefetch=0,
            grid=(num_tiles,),
            in_specs=[full_spec, full_spec, idx_spec, idx_spec],
            out_specs=pl.BlockSpec((1, 1, 1), lambda t: (t, 0, 0)),
        ),
        compiler_params=pltpu.CompilerParams(
            dimension_semantics=("parallel",),
            vmem_limit_bytes=vmem_limit,
        ),
    )(image_p, audio_p, iidx, aidx)

    return (jnp.sum(partials) / jnp.float32(n)).reshape(1)


class DotLossPallas:
    """Mirrors DotLoss: fresh impostors every call (deterministic given the seed)."""

    def __init__(self, margin=1.0, seed=1234):
        self.margin = float(margin)
        self._key = jax.random.PRNGKey(seed)

    def __call__(self, image_outputs, audio_outputs, key=None):
        if key is None:
            self._key, key = jax.random.split(self._key)
        return dot_loss(image_outputs, audio_outputs, key, margin=self.margin)


def _dot_loss_reference(image_outputs, audio_outputs, key, margin=1.0):
    """Pure-JAX reference using the same impostor indices."""
    n = image_outputs.shape[0]
    i_imp, a_imp = _sample_impostors(key, n)
    img = image_outputs.astype(jnp.float32)
    aud = audio_outputs.astype(jnp.float32)
    anchorsim = jnp.sum(img * aud, axis=-1)
    iimpsim = jnp.sum(img[i_imp] * aud, axis=-1)
    aimpsim = jnp.sum(img * aud[a_imp], axis=-1)
    per = jnp.maximum(margin + iimpsim - anchorsim, 0.0) + jnp.maximum(margin + aimpsim - anchorsim, 0.0)
    return (jnp.sum(per) / n).reshape(1)


if __name__ == "__main__":
    # Small shapes consistent with the module's forward: (batch, embedding_dim).
    n, d = 8, 32
    key = jax.random.PRNGKey(0)
    k_img, k_aud, k_imp = jax.random.split(key, 3)
    image_outputs = jax.random.normal(k_img, (n, d), dtype=jnp.float32)
    audio_outputs = jax.random.normal(k_aud, (n, d), dtype=jnp.float32)

    loss_fn = DotLossPallas(margin=1.0)
    loss = loss_fn(image_outputs, audio_outputs, key=k_imp)
    jax.block_until_ready(loss)

    assert loss.shape == (1,)
    assert loss.dtype == jnp.float32

    ref = _dot_loss_reference(image_outputs, audio_outputs, k_imp, margin=1.0)
    assert jnp.allclose(loss, ref, rtol=1e-5, atol=1e-5), (loss, ref)

    print("KERNEL_OK")
</pallas_src>

<mosaic_0001>
module attributes {stable_mosaic.version = 11 : i64} {
  func.func @_dot_loss_kernel(%arg0: i32, %arg1: memref<8x32xf32, #tpu.memory_space<vmem>>, %arg2: memref<8x32xf32, #tpu.memory_space<vmem>>, %arg3: memref<1x8x1xi32, #tpu.memory_space<vmem>>, %arg4: memref<1x8x1xi32, #tpu.memory_space<vmem>>, %arg5: memref<1x1x1xf32, #tpu.memory_space<vmem>>) attributes {dimension_semantics = [#tpu.dimension_semantics<parallel>], iteration_bounds = array<i64: 1>, scalar_prefetch = 0 : i64, scratch_operands = 0 : i64, tpu.core_type = #tpu.core_type<tc>, window_params = [{pipeline_mode = #tpu.pipeline_mode<synchronous>, transform_indices = @transform_0, window_bounds = array<i64: 8, 32>}, {pipeline_mode = #tpu.pipeline_mode<synchronous>, transform_indices = @transform_1, window_bounds = array<i64: 8, 32>}, {transform_indices = @transform_2, window_bounds = array<i64: 1, 8, 1>}, {transform_indices = @transform_3, window_bounds = array<i64: 1, 8, 1>}, {transform_indices = @transform_4, window_bounds = array<i64: 1, 1, 1>}]} {
    %c8_i32 = arith.constant 8 : i32
    %0 = arith.muli %arg0, %c8_i32 : i32
    %1 = tpu.assume_multiple %0, 8 : i32
    %2 = arith.index_cast %1 : i32 to index
    %c0 = arith.constant 0 : index
    %3 = vector.load %arg1[%2, %c0] : memref<8x32xf32, #tpu.memory_space<vmem>>, vector<8x32xf32>
    %4 = arith.index_cast %1 : i32 to index
    %c0_0 = arith.constant 0 : index
    %5 = vector.load %arg2[%4, %c0_0] : memref<8x32xf32, #tpu.memory_space<vmem>>, vector<8x32xf32>
    %c0_1 = arith.constant 0 : index
    %c0_2 = arith.constant 0 : index
    %c0_3 = arith.constant 0 : index
    %6 = vector.load %arg3[%c0_1, %c0_2, %c0_3] : memref<1x8x1xi32, #tpu.memory_space<vmem>>, vector<1x8x1xi32>
    %7 = vector.shape_cast %6 : vector<1x8x1xi32> to vector<8x1xi32>
    %c0_4 = arith.constant 0 : index
    %c0_5 = arith.constant 0 : index
    %c0_6 = arith.constant 0 : index
    %8 = vector.load %arg4[%c0_4, %c0_5, %c0_6] : memref<1x8x1xi32, #tpu.memory_space<vmem>>, vector<1x8x1xi32>
    %9 = vector.shape_cast %8 : vector<1x8x1xi32> to vector<8x1xi32>
    %10 = tpu.iota {dimensions = array<i32: 1>} : vector<8x8xi32>
    %11 = vector.broadcast %7 : vector<8x1xi32> to vector<8x8xi32>
    %12 = arith.cmpi eq, %10, %11 : vector<8x8xi32>
    %13 = arith.extui %12 : vector<8x8xi1> to vector<8x8xi32>
    %14 = arith.sitofp %13 : vector<8x8xi32> to vector<8x8xf32>
    %c0_7 = arith.constant 0 : index
    %c0_8 = arith.constant 0 : index
    %15 = vector.load %arg1[%c0_7, %c0_8] : memref<8x32xf32, #tpu.memory_space<vmem>>, vector<8x32xf32>
    %cst = arith.constant dense<0.000000e+00> : vector<8x32xf32>
    %16 = tpu.matmul %14, %15, %cst {dimension_numbers = #tpu.dot_dimension_numbers<[1], [0], [0], [1], [0, 0, 1, 1], [], []>} : vector<8x8xf32>, vector<8x32xf32>, vector<8x32xf32> -> vector<8x32xf32>
    %17 = vector.broadcast %9 : vector<8x1xi32> to vector<8x8xi32>
    %18 = arith.cmpi eq, %10, %17 : vector<8x8xi32>
    %19 = arith.extui %18 : vector<8x8xi1> to vector<8x8xi32>
    %20 = arith.sitofp %19 : vector<8x8xi32> to vector<8x8xf32>
    %c0_9 = arith.constant 0 : index
    %c0_10 = arith.constant 0 : index
    %21 = vector.load %arg2[%c0_9, %c0_10] : memref<8x32xf32, #tpu.memory_space<vmem>>, vector<8x32xf32>
    %cst_11 = arith.constant dense<0.000000e+00> : vector<8x32xf32>
    %22 = tpu.matmul %20, %21, %cst_11 {dimension_numbers = #tpu.dot_dimension_numbers<[1], [0], [0], [1], [0, 0, 1, 1], [], []>} : vector<8x8xf32>, vector<8x32xf32>, vector<8x32xf32> -> vector<8x32xf32>
    %23 = arith.mulf %3, %5 : vector<8x32xf32>
    %cst_12 = arith.constant dense<0.000000e+00> : vector<8xf32>
    %24 = vector.multi_reduction <add>, %23, %cst_12 [1] : vector<8x32xf32> to vector<8xf32>
    %25 = vector.shape_cast %24 : vector<8xf32> to vector<8x1xf32>
    %26 = arith.mulf %16, %5 : vector<8x32xf32>
    %cst_13 = arith.constant dense<0.000000e+00> : vector<8xf32>
    %27 = vector.multi_reduction <add>, %26, %cst_13 [1] : vector<8x32xf32> to vector<8xf32>
    %28 = vector.shape_cast %27 : vector<8xf32> to vector<8x1xf32>
    %29 = arith.mulf %3, %22 : vector<8x32xf32>
    %cst_14 = arith.constant dense<0.000000e+00> : vector<8xf32>
    %30 = vector.multi_reduction <add>, %29, %cst_14 [1] : vector<8x32xf32> to vector<8xf32>
    %31 = vector.shape_cast %30 : vector<8xf32> to vector<8x1xf32>
    %cst_15 = arith.constant 1.000000e+00 : f32
    %32 = vector.broadcast %cst_15 : f32 to vector<8x1xf32>
    %33 = arith.addf %32, %28 : vector<8x1xf32>
    %34 = arith.subf %33, %25 : vector<8x1xf32>
    %cst_16 = arith.constant 1.000000e+00 : f32
    %35 = vector.broadcast %cst_16 : f32 to vector<8x1xf32>
    %36 = arith.addf %35, %31 : vector<8x1xf32>
    %37 = arith.subf %36, %25 : vector<8x1xf32>
    %cst_17 = arith.constant 0.000000e+00 : f32
    %38 = vector.broadcast %cst_17 : f32 to vector<8x1xf32>
    %39 = arith.maximumf %34, %38 : vector<8x1xf32>
    %cst_18 = arith.constant 0.000000e+00 : f32
    %40 = vector.broadcast %cst_18 : f32 to vector<8x1xf32>
    %41 = arith.maximumf %37, %40 : vector<8x1xf32>
    %42 = arith.addf %39, %41 : vector<8x1xf32>
    %43 = tpu.iota {dimensions = array<i32: 0>} : vector<8x1xi32>
    %44 = vector.broadcast %1 : i32 to vector<8x1xi32>
    %45 = arith.addi %44, %43 : vector<8x1xi32>
    %c8_i32_19 = arith.constant 8 : i32
    %46 = vector.broadcast %c8_i32_19 : i32 to vector<8x1xi32>
    %47 = arith.cmpi slt, %45, %46 : vector<8x1xi32>
    %cst_20 = arith.constant 0.000000e+00 : f32
    %48 = vector.broadcast %cst_20 : f32 to vector<8x1xf32>
    %49 = arith.select %47, %42, %48 : vector<8x1xi1>, vector<8x1xf32>
    %cst_21 = arith.constant dense<0.000000e+00> : vector<1xf32>
    %50 = vector.multi_reduction <add>, %49, %cst_21 [0] : vector<8x1xf32> to vector<1xf32>
    %51 = vector.shape_cast %50 : vector<1xf32> to vector<1x1xf32>
    %52 = vector.shape_cast %51 : vector<1x1xf32> to vector<1x1x1xf32>
    %c0_22 = arith.constant 0 : index
    %c0_23 = arith.constant 0 : index
    %c0_24 = arith.constant 0 : index
    %53 = vector.load %arg5[%c0_22, %c0_23, %c0_24] : memref<1x1x1xf32, #tpu.memory_space<vmem>>, vector<1x1x1xf32>
    tpu.vector_store %arg5[%c0_22, %c0_23, %c0_24], %52 {strides = array<i32>} : memref<1x1x1xf32, #tpu.memory_space<vmem>>, vector<1x1x1xf32>,
    return
  }
  func.func @transform_0(%arg0: i32) -> (i32, i32) {
    %c0_i32 = arith.constant 0 : i32
    %c0_i32_0 = arith.constant 0 : i32
    %c0_i32_1 = arith.constant 0 : i32
    return %c0_i32, %c0_i32_0 : i32, i32
  }
  func.func @transform_1(%arg0: i32) -> (i32, i32) {
    %c0_i32 = arith.constant 0 : i32
    %c0_i32_0 = arith.constant 0 : i32
    %c0_i32_1 = arith.constant 0 : i32
    return %c0_i32, %c0_i32_0 : i32, i32
  }
  func.func @transform_2(%arg0: i32) -> (i32, i32, i32) {
    %c0_i32 = arith.constant 0 : i32
    %c0_i32_0 = arith.constant 0 : i32
    %c0_i32_1 = arith.constant 0 : i32
    return %arg0, %c0_i32, %c0_i32_0 : i32, i32, i32
  }
  func.func @transform_3(%arg0: i32) -> (i32, i32, i32) {
    %c0_i32 = arith.constant 0 : i32
    %c0_i32_0 = arith.constant 0 : i32
    %c0_i32_1 = arith.constant 0 : i32
    return %arg0, %c0_i32, %c0_i32_0 : i32, i32, i32
  }
  func.func @transform_4(%arg0: i32) -> (i32, i32, i32) {
    %c0_i32 = arith.constant 0 : i32
    %c0_i32_0 = arith.constant 0 : i32
    %c0_i32_1 = arith.constant 0 : i32
    return %arg0, %c0_i32, %c0_i32_0 : i32, i32, i32
  }
}

</mosaic_0001>

<bundles_post_ra>
// kernel: dot_loss.1
= control target key start
LH: loop header
LB: loop body
LE: loop exit
PB: predicated region body
PF: predicated region fallthrough
CT: control target
= control target key end

     0   :  { %s336_s0 = inlined_call_operand.vmem [shape: f32[8,32], index: 0, kind: input, shape index: {}]   ;;  %s337_s1 = inlined_call_operand.vmem [shape: f32[8,32], index: 1, kind: input, shape index: {}]   ;;  %s338_s2 = inlined_call_operand.vmem [shape: s32[1,8,1], index: 2, kind: input, shape index: {}]   ;;  %s339_s3 = inlined_call_operand.vmem [shape: s32[1,8,1], index: 3, kind: input, shape index: {}]   ;;  %s340_s4 = inlined_call_operand.hbm [shape: f32[1,1,1], index: 4, kind: output, shape index: {}]  }
   0x1   :  { %v23_v0 = vld [vmem:[%s338_s2] sm:$0xff] }
   0x2   :  { %9 = vsyncpa [#allocation3], 0  ;;  %v283_v1 = vmov 0   ;;  %v284_v2 = vmov 0.0   ;;  %v33_v3 = vld [vmem:[%s336_s0] sm:$0xff]  ;;  %vm285_vm0 = vmmov 0   ;;  %v25_v6 = vlaneseq }
   0x3   :  { %258 = vset.pattern.permute.xlu0 %v283_v1  ;;  %244 = vmatprep.subr.mxu0 %v284_v2  ;;  %v24_v4 = vld [vmem:[%s339_s3] sm:$0xff]  ;;  %vm34_vm1 = vcmask 64512   ;;  %vm189_vm4 = vcmask 261120   ;;  %s286_s0 = smov [#allocation2]   ;;  %vm220_vm5 = vcmask 0  }
   0x4   :  { %28 = vperm.xlu0 %258, %v23_v0   ;;  %249 = vmatprep.subr.mxu1 %v284_v2  ;;  %v114_v5 = vld [vmem:[%s337_s1] sm:$0xff]  ;;  %v26_v7 = vand.u32 127, %v25_v6  ;;  %s228_s1 = sshll.u32 %s286_s0, 4  ;;  %s229_s1 = int_to_ptr.vmem [resolvable:$true] %s228_s1 }
   0x5   :  { %245 = vmatpush3.msra.mxu0 %v33_v3  ;;  %246 = vmatprep.mubr.msk.f32.mxu0 %vm285_vm0, %v284_v2  ;;  %v188_v12 = vmul.f32 %v114_v5, %v33_v3  ;;  %s259_s3 = scalar_lea.vmem %s229_s1, 16  ;;  %s263_s22 = scalar_lea.vmem %s229_s1, 32 }
   0x6   :  { %251 = vmatprep.mubr.msk.f32.mxu1 %vm285_vm0, %v284_v2  ;;  %250 = vmatpush3.msra.mxu1 %v114_v5  ;;  %p260_p0 = scmp.ne.s32.totalorder %s229_s1, %s259_s3  ;;  %p264_p1 = scmp.lt.s32.totalorder %s229_s1, %s229_s1 }
   0x7   :  { %v190_v13 = vsel %vm189_vm4, %v188_v12, 0.0  ;;  %p265_p2 = scmp.lt.s32.totalorder %s263_s22, %s259_s3 }
   0x8   :  { %109 = vperm.xlu0 %258, %v24_v4  }
   0x9   :  { %p266_p3 = por %p265_p2, %p264_p1 }
   0xb   :  { %p267_p4 = pnand %p266_p3, %p260_p0 }
  0x27   :  { %191 = vadd.xlane.f32.xlu0 %v190_v13 }
  0x83   :  { %v29_v8 = vpop.permute.xlu0 %28 }
  0x84   :  { %vm30_vm2 = vcmp.eq.s32.totalorder %v26_v7, %v29_v8 }
  0x85   :  { %v236_v9 = vsel %vm30_vm2, 1.0, %v284_v2 }
  0x86   :  { %247 = vmatmul.mubr.msk.f32.vlgmr.msra.gmra.mrb[0].mxu0 %vm34_vm1, %v236_v9 }
  0x87   :  { %v110_v10 = vpop.permute.xlu0 %109 }
  0x88   :  { %vm111_vm3 = vcmp.eq.s32.totalorder %v26_v7, %v110_v10 }
  0x89   :  { %v238_v11 = vsel %vm111_vm3, 1.0, %v284_v2 }
  0x8a   :  { %252 = vmatmul.mubr.msk.f32.vlgmr.msra.gmra.mrb[0].mxu1 %vm34_vm1, %v238_v11 }
  0xb4   :  { %v192_v24 = vpop.xlane.xlu0 %191 }
 0x159   :  { %v104_v14 = vpop.f32.mrb[0].mxu0 }
 0x15a   :  { %v193_v15 = vmul.f32 %v114_v5, %v104_v14  ;;  %v248_v16 = vpop.f32.mrb[1].mxu0 }
 0x15c   :  { %v194_v17 = vsel %vm189_vm4, %v193_v15, 0.0 }
 0x15d   :  { %v184_v18 = vpop.f32.mrb[0].mxu1  ;;  %195 = vadd.xlane.f32.xlu1 %v194_v17 }
 0x15e   :  { %v197_v19 = vmul.f32 %v184_v18, %v33_v3  ;;  %v253_v20 = vpop.f32.mrb[1].mxu1 }
 0x160   :  { %v198_v21 = vsel %vm189_vm4, %v197_v19, 0.0 }
 0x161   :  { %199 = vadd.xlane.f32.xlu1 %v198_v21 }
 0x1ea   :  { %v196_v22 = vpop.xlane.xlu1 %195 }
 0x1eb   :  { %v201_v23 = vadd.f32 1.0, %v196_v22 }
 0x1ed   :  { %v202_v26 = vsub.f32 %v201_v23, %v192_v24 }
 0x1ee   :  { %v200_v25 = vpop.xlane.xlu1 %199 }
 0x1ef   :  { %v203_v27 = vadd.f32 1.0, %v200_v25  ;;  %v205_v29 = vmax.f32 %v202_v26, 0.0 }
 0x1f1   :  { %v204_v28 = vsub.f32 %v203_v27, %v192_v24 }
 0x1f3   :  { %v206_v30 = vmax.f32 %v204_v28, 0.0 }
 0x1f5   :  { %v207_v31 = vadd.f32 %v206_v30, %v205_v29 }
 0x1f7   :  { %v214_v32 = vrot.slane %v207_v31, 4 }
 0x1f9   :  { %v215_v33 = vadd.f32 %v214_v32, %v207_v31 }
 0x1fb   :  { %v216_v34 = vrot.slane %v215_v33, 2 }
 0x1fd   :  { %v217_v35 = vadd.f32 %v216_v34, %v215_v33 }
 0x1ff   :  { %v218_v36 = vrot.slane %v217_v35, 1 }
 0x201   :  { %v219_v37 = vadd.f32 %v218_v36, %v217_v35 }
 0x203   :  { %221 = vst.msk [vmem:[#allocation2] sm:$0x1] %vm220_vm5, %v219_v37 }
 0x204   :  { %270 = shalt.err (!%p267_p4)
}
 0x205   :  { %s271_s25 = scalar_lea.hbm %s340_s4, 16 }
 0x206   :  { %p272_p5 = scmp.ne.s32.totalorder %s340_s4, %s271_s25  ;;  %p275_p6 = scmp.lt.u32.totalorder %s271_s25, %s340_s4 }
 0x208   :  { %p277_p7 = pnand %p275_p6, %p272_p5 }
 0x20a   :  { %280 = shalt.err (!%p277_p7)
}
 0x20b   :  { %231 = dma.vmem_to_hbm [thread:$0]  %s229_s1, 16, %s340_s4, [#allocation3]  }
 0x20c   :  { %281 = dma.done.wait [#allocation3], 16  }
 0x20d   :  { %282 = vsyncadd [#allocation3], 4294967280 }
 0x20e   :  { %235 = vsyncpa [#allocation3], 1 }

</bundles_post_ra>
